<compile_context>
chip_gen: v7x
topology: tpu7x:2x2x1
jax: 0.10.0
libtpu: 0.0.40
codegen_flags: <defaults>
</compile_context>

<pallas_src>
import functools

import jax
import jax.numpy as jnp
from jax.experimental import pallas as pl
from jax.experimental.pallas import tpu as pltpu


def _cdiv(a, b):
    return -(-a // b)


def _round_up(x, m):
    return _cdiv(x, m) * m


def _vmem_tile_budget_bytes():
    """Double-buffered tile budget: half of physical VMEM, v7x-safe fallback."""
    cap = 64 * 1024 * 1024  # v7x physical VMEM per TC (the smallest generation)
    try:
        info = pltpu.get_tpu_info()
        cap = int(getattr(info, "vmem_capacity_bytes", cap))
    except Exception:
        pass
    return min(cap // 2, 48 * 1024 * 1024)


def _choose_block_m(n, d_in, enc, in_itemsize, out_itemsize):
    """Largest row tile whose double-buffered in/out tiles fit the VMEM budget,
    capped at 4096 rows, with an even (>= 2) grid-step count when possible so
    v7x's two TensorCores split the work evenly."""
    bytes_per_row = 2 * (in_itemsize * d_in + out_itemsize * 2 * enc)  # 2x buffered
    budget = _vmem_tile_budget_bytes()
    bm = budget // bytes_per_row
    bm = max(8, min(int(bm), 4096))
    bm = (bm // 8) * 8
    if n > 8:
        steps = _cdiv(n, bm)
        if steps < 2:
            steps = 2
        if steps % 2:
            steps += 1
        bm = min(bm, _round_up(_cdiv(n, steps), 8))
    return max(8, bm)


def prepare_b(B):
    """Hoist out of the hot path: (2*pi*B).T as f32, MXU-natural (K, N)."""
    return ((2.0 * jnp.pi) * B.astype(jnp.float32)).T


@functools.partial(jax.jit, static_argnames=("out_dtype",))
def gaussian_encoding_prepped(v, b_prep, *, out_dtype=None):
    """v: (..., input_size), b_prep: (input_size, encoding_size) = (2*pi*B).T.

    Returns (..., 2*encoding_size) = [cos(2*pi*v@B.T), sin(2*pi*v@B.T)].
    out_dtype defaults to v.dtype; pass jnp.bfloat16 to halve HBM writeback
    when the consumer tolerates it.
    """
    *lead, d_in = v.shape
    d_in_b, enc = b_prep.shape
    assert d_in == d_in_b
    out_dtype = jnp.dtype(v.dtype) if out_dtype is None else jnp.dtype(out_dtype)

    v2d = v.reshape(-1, d_in)
    n = v2d.shape[0]

    in_itemsize = jnp.dtype(v.dtype).itemsize
    out_itemsize = out_dtype.itemsize
    block_m = _choose_block_m(n, d_in, enc, in_itemsize, out_itemsize)
    grid_m = pl.cdiv(n, block_m)  # partial last block: OOB reads padded, writes dropped

    # vmem_limit from the actual tile sizes + headroom (kept < v7x's 64 MiB).
    in_tile = block_m * d_in * in_itemsize
    out_tile = block_m * 2 * enc * out_itemsize
    b_bytes = d_in * enc * 4
    vmem_limit = 2 * (in_tile + out_tile) + 2 * b_bytes + (6 << 20)
    vmem_limit = int(max(32 << 20, min(vmem_limit, 56 << 20)))

    compiler_params = pltpu.CompilerParams(
        dimension_semantics=("parallel",),
        vmem_limit_bytes=vmem_limit,
    )
    v_spec = pl.BlockSpec((block_m, d_in), lambda i: (i, 0))
    b_spec = pl.BlockSpec((d_in, enc), lambda i: (0, 0))

    if enc % 128 == 0:
        # Single (n, 2*enc) output; both slab stores are lane-dense/unmasked.
        def kernel(v_ref, b_ref, o_ref):
            vp = jnp.dot(v_ref[...], b_ref[...],
                         preferred_element_type=jnp.float32)
            # TODO(synk): if a v7x bundle dump shows the VALU slot saturating on
            # the two polynomials, switch to a fused sincos (shared range
            # reduction, then sin(r) and sin(r + pi/2)).
            o_ref[:, :enc] = jnp.cos(vp).astype(o_ref.dtype)
            o_ref[:, enc:] = jnp.sin(vp).astype(o_ref.dtype)

        out2d = pl.pallas_call(
            kernel,
            out_shape=jax.ShapeDtypeStruct((n, 2 * enc), out_dtype),
            grid_spec=pltpu.PrefetchScalarGridSpec(
                num_scalar_prefetch=0,
                grid=(grid_m,),
                in_specs=[v_spec, b_spec],
                out_specs=pl.BlockSpec((block_m, 2 * enc), lambda i: (i, 0)),
            ),
            compiler_params=compiler_params,
        )(v2d, b_prep)
    else:
        # enc not lane-aligned: a single (n, 2*enc) tile would start the sin
        # slab mid-vreg (masked vst + XLU relayout).  Emit two lane-dense
        # outputs and pay one concatenate in the wrapper instead.
        def kernel2(v_ref, b_ref, cos_ref, sin_ref):
            vp = jnp.dot(v_ref[...], b_ref[...],
                         preferred_element_type=jnp.float32)
            cos_ref[...] = jnp.cos(vp).astype(cos_ref.dtype)
            sin_ref[...] = jnp.sin(vp).astype(sin_ref.dtype)

        cos2d, sin2d = pl.pallas_call(
            kernel2,
            out_shape=(jax.ShapeDtypeStruct((n, enc), out_dtype),
                       jax.ShapeDtypeStruct((n, enc), out_dtype)),
            grid_spec=pltpu.PrefetchScalarGridSpec(
                num_scalar_prefetch=0,
                grid=(grid_m,),
                in_specs=[v_spec, b_spec],
                out_specs=[pl.BlockSpec((block_m, enc), lambda i: (i, 0)),
                           pl.BlockSpec((block_m, enc), lambda i: (i, 0))],
            ),
            compiler_params=compiler_params,
        )(v2d, b_prep)
        out2d = jnp.concatenate([cos2d, sin2d], axis=-1)

    return out2d.reshape(*lead, 2 * enc)


def gaussian_encoding(v, B, *, out_dtype=None):
    """Convenience wrapper matching the PyTorch forward: v (..., d_in), B (enc, d_in)."""
    return gaussian_encoding_prepped(v, prepare_b(B), out_dtype=out_dtype)


if __name__ == "__main__":
    # Module config (synthetic, deterministic init of the B buffer).
    input_size = 16
    encoding_size = 128   # multiple of 128 -> single-output lane-dense path
    sigma = 1.0

    key = jax.random.PRNGKey(0)
    k_b, k_v = jax.random.split(key)

    # B = sigma * randn(encoding_size, input_size)
    B = sigma * jax.random.normal(k_b, (encoding_size, input_size), dtype=jnp.float32)

    # (batch=2, seq=9, input_size=16) -> 18 flattened rows: exercises the
    # cdiv grid with a partial last block (no pad / slice round trip).
    v = jax.random.normal(k_v, (2, 9, input_size), dtype=jnp.float32)

    b_prep = prepare_b(B)   # hoisted once, outside the per-call path

    out = gaussian_encoding_prepped(v, b_prep)
    out = jax.block_until_ready(out)

    # Reference check in plain JAX.
    vp_ref = 2.0 * jnp.pi * jnp.einsum("bsi,ei->bse", v, B)
    ref = jnp.concatenate([jnp.cos(vp_ref), jnp.sin(vp_ref)], axis=-1)
    assert out.shape == (2, 9, 2 * encoding_size)
    assert out.dtype == v.dtype
    assert jnp.allclose(out, ref, atol=1e-4, rtol=1e-4)

    # Optional bf16 output path (recommended downstream: halves the
    # write-dominated HBM traffic).
    out_bf16 = jax.block_until_ready(
        gaussian_encoding_prepped(v, b_prep, out_dtype=jnp.bfloat16))
    assert out_bf16.dtype == jnp.bfloat16
    assert jnp.allclose(out_bf16.astype(jnp.float32), ref, atol=3e-2, rtol=3e-2)

    print("KERNEL_OK")
</pallas_src>

<mosaic_0001>
module attributes {stable_mosaic.version = 11 : i64} {
  func.func @kernel(%arg0: i32, %arg1: memref<16x16xf32, #tpu.memory_space<vmem>>, %arg2: memref<16x128xf32, #tpu.memory_space<vmem>>, %arg3: memref<16x256xf32, #tpu.memory_space<vmem>>) attributes {dimension_semantics = [#tpu.dimension_semantics<parallel>], iteration_bounds = array<i64: 2>, scalar_prefetch = 0 : i64, scratch_operands = 0 : i64, tpu.core_type = #tpu.core_type<tc>, window_params = [{transform_indices = @transform_0, window_bounds = array<i64: 16, 16>}, {pipeline_mode = #tpu.pipeline_mode<synchronous>, transform_indices = @transform_1, window_bounds = array<i64: 16, 128>}, {transform_indices = @transform_2, window_bounds = array<i64: 16, 256>}]} {
    %c0 = arith.constant 0 : index
    %c0_0 = arith.constant 0 : index
    %0 = vector.load %arg1[%c0, %c0_0] : memref<16x16xf32, #tpu.memory_space<vmem>>, vector<16x16xf32>
    %c0_1 = arith.constant 0 : index
    %c0_2 = arith.constant 0 : index
    %1 = vector.load %arg2[%c0_1, %c0_2] : memref<16x128xf32, #tpu.memory_space<vmem>>, vector<16x128xf32>
    %cst = arith.constant dense<0.000000e+00> : vector<16x128xf32>
    %2 = tpu.matmul %0, %1, %cst {dimension_numbers = #tpu.dot_dimension_numbers<[1], [0], [0], [1], [0, 0, 1, 1], [], []>} : vector<16x16xf32>, vector<16x128xf32>, vector<16x128xf32> -> vector<16x128xf32>
    %3 = math.cos %2 : vector<16x128xf32>
    %c0_3 = arith.constant 0 : index
    %c0_4 = arith.constant 0 : index
    %4 = vector.load %arg3[%c0_3, %c0_4] : memref<16x256xf32, #tpu.memory_space<vmem>>, vector<16x128xf32>
    tpu.vector_store %arg3[%c0_3, %c0_4], %3 {strides = array<i32>} : memref<16x256xf32, #tpu.memory_space<vmem>>, vector<16x128xf32>,
    %5 = math.sin %2 : vector<16x128xf32>
    %c0_5 = arith.constant 0 : index
    %c128 = arith.constant 128 : index
    %6 = vector.load %arg3[%c0_5, %c128] : memref<16x256xf32, #tpu.memory_space<vmem>>, vector<16x128xf32>
    tpu.vector_store %arg3[%c0_5, %c128], %5 {strides = array<i32>} : memref<16x256xf32, #tpu.memory_space<vmem>>, vector<16x128xf32>,
    return
  }
  func.func @transform_0(%arg0: i32) -> (i32, i32) {
    %c0_i32 = arith.constant 0 : i32
    %c0_i32_0 = arith.constant 0 : i32
    return %arg0, %c0_i32 : i32, i32
  }
  func.func @transform_1(%arg0: i32) -> (i32, i32) {
    %c0_i32 = arith.constant 0 : i32
    %c0_i32_0 = arith.constant 0 : i32
    %c0_i32_1 = arith.constant 0 : i32
    return %c0_i32, %c0_i32_0 : i32, i32
  }
  func.func @transform_2(%arg0: i32) -> (i32, i32) {
    %c0_i32 = arith.constant 0 : i32
    %c0_i32_0 = arith.constant 0 : i32
    return %arg0, %c0_i32 : i32, i32
  }
}

</mosaic_0001>

<bundles_post_ra>
// kernel: gaussian_encoding_prepped.1
= control target key start
LH: loop header
LB: loop body
LE: loop exit
PB: predicated region body
PF: predicated region fallthrough
CT: control target
= control target key end

     0   :  { %s1117_s9 = smov 0   ;;  %s1119_s10 = smov 0   ;;  %s1289_s0 = inlined_call_operand.vmem [shape: f32[18,16], index: 0, kind: input, shape index: {}]   ;;  %s1290_s1 = inlined_call_operand.vmem [shape: f32[16,128], index: 1, kind: input, shape index: {}]   ;;  %s1291_s2 = inlined_call_operand.vmem [shape: f32[18,256], index: 2, kind: output, shape index: {}]  }
   0x1   :  { %s1121_s11 = smov 0  }
   0x2 LB: > { %s1130_s12 = sadd.s32 4294967295, %s1062_s11   ;;  %s1132_s13 = sadd.s32 1, %s1062_s11   ;;  %s1062_s11 = sphi %s1121_s11, %s1298_s11   ;;  %s1058_s10 = sphi %s1119_s10, %s1297_s10   ;;  %s1054_s9 = sphi %s1117_s9, %s1296_s9  }
   0x3   : > { %s63_s14 = ssub.s32 %s1062_s11, %s1132_s13  ;;  %s66_s15 = sadd.s32 1, %s1058_s10 }
   0x4   : > { %p64_p0 = scmp.eq.s32.totalorder %s63_s14, 0  ;;  %p76_p1 = scmp.ne.s32.totalorder %s1058_s10, %s1054_s9 }
   0x5   : > { %p77_p2 = scmp.eq.s32.totalorder %s1130_s12, 1  ;;  %p837_p3 = scmp.ge.s32.totalorder %s1062_s11, 1 }
   0x6   : > { %s1140_s16 = scalar_select %p64_p0, %s1058_s10, %s66_s15  }
   0x7   : > { %p1142_p4 = por %p77_p2, %p76_p1  ;;  %p121_p5 = scmp.lt.s32.totalorder %s1062_s11, 3 }
   0x9   : > { %p122_p6 = pnand %p837_p3, %p121_p5 }
   0xa   : > { %v168_v0 = vld [vmem:[%s1290_s1] sm:$0xff] (!%p122_p6)  ;;  %v169_v1 = vld [vmem:[%s1290_s1 + $0x8] sm:$0xff] (!%p122_p6)  ;;  %s1153_s22 = sshll.u32 (!%p122_p6), %s1130_s12, 1  ;;  %vm170_vm0 = vcmask (!%p122_p6), 130048   ;;  %v1096_v27 = vmov (!%p122_p6), 683565275  }
   0xb   : > { %125 = sbr.rel (%p122_p6) target bundleno = 375 (0x177), region = 28  ;;  %v894_v2 = vpack.c.bf16 (!%p122_p6), %v169_v1, %v168_v0  ;;  %p151_p7 = scmp.lt.s32.totalorder (!%p122_p6), %s1153_s22, 2  ;;  %v1097_v31 = vmov (!%p122_p6), 2475754826   ;;  %v1098_v33 = vmov (!%p122_p6), 2131351028  }
   0xc   : > { %v1099_v35 = vmov (!%p122_p6), 2102212464   ;;  %v1100_v37 = vmov (!%p122_p6), 920167782   ;;  %v1101_v44 = vmov (!%p122_p6), 1326507024  }
   0xd   : > { %895 = vmatprep.subr.bf16.mxu0 (!%p122_p6), %v894_v2  ;;  %s143_s28 = sand.u32 (!%p122_p6), 1, %s1054_s9  }
   0xe   : > { %897 = vmatpush3.bf16.msra.mxu0 (!%p122_p6), %v894_v2  ;;  %s838_s29 = sshll.u32 (!%p122_p6), %s143_s28, 5 }
   0xf   : > { %s1222_s30 = scalar_lea.vmem (!%p122_p6), [#allocation2], %s838_s29  }
  0x12   : > { %s152_s23 = scalar_select %p151_p7, %s1153_s22, 2 }
  0x13   : > { %s678_s3 = ssub.s32 (%p1142_p4), 3, %s1153_s22  ;;  %s880_s4 = sshll.u32 (%p1142_p4), %s1130_s12, 5 }
  0x14   : > { %s840_s24 = sshll.u32 %s152_s23, 3  ;;  %p679_p8 = scmp.lt.s32.totalorder (%p1142_p4), %s678_s3, 2 }
  0x15   : > { %s154_s27 = scalar_lea.vmem %s1289_s0, %s840_s24  ;;  %s1236_s7 = scalar_lea.vmem (%p1142_p4), %s1291_s2, %s880_s4  }
  0x16   : > { %v166_v3 = vld [vmem:[%s154_s27] sm:$0xff]  ;;  %v167_v4 = vld [vmem:[%s154_s27 + $0x8] sm:$0xff] }
  0x17   : > { %891 = vmatprep.mubr.msk.f32.mxu0 %vm170_vm0, %v166_v3 }
  0x18   : > { %892 = vmatmul.mubr.msk.f32.vlgmr.msra.gmra.mrb[0].mxu0 %vm170_vm0, %v167_v4 }
  0xeb   : > { %v1160_v5 = vpop.f32.mrb[0].mxu0 }
  0xec   : > { %v355_v6 = vand.u32 2147483647, %v1160_v5  ;;  %v358_v7 = vand.u32 2139095040, %v1160_v5  ;;  %v1164_v8 = vpop.f32.mrb[1].mxu0  ;;  %vm357_vm15 = vcmp.lt.s32.totalorder %v1160_v5, 0 }
  0xed   : > { %v255_v9 = vand.u32 2139095040, %v1164_v8  ;;  %v252_v12 = vand.u32 2147483647, %v1164_v8 }
  0xee   : > { %v359_v10 = vshrl.u32 %v358_v7, 23  ;;  %v362_v11 = vand.u32 8388607, %v355_v6  ;;  %vm356_vm0 = vcmp.le.f32.partialorder %v355_v6, 0.7853982 }
  0xef   : > { %v256_v13 = vshrl.u32 %v255_v9, 23  ;;  %v1172_v18 = vand.u32 8388607, %v252_v12 }
  0xf0   : > { %v847_v14 = vadd.s32 4294967169, %v359_v10  ;;  %v363_v17 = vor.u32 8388608, %v362_v11 }
  0xf1   : > { %v843_v15 = vadd.s32 4294967169, %v256_v13  ;;  %v260_v25 = vor.u32 8388608, %v1172_v18 }
  0xf2   : > { %v365_v16 = vadd.s32 1, %v847_v14  ;;  %v1174_v24 = vshll.u32 %v363_v17, 8 }
  0xf3   : > { %v262_v19 = vadd.s32 1, %v843_v15 }
  0xf4   : > { %vm366_vm1 = vcmp.gt.s32.totalorder %v365_v16, 0 }
  0xf5   : > { %v367_v20 = vsel %vm366_vm1, %v365_v16, 0  ;;  %vm263_vm2 = vcmp.gt.s32.totalorder %v262_v19, 0  ;;  %vm254_vm1 = vcmp.lt.s32.totalorder %v1164_v8, 0 }
  0xf6   : > { %v368_v21 = vshrl.u32 %v367_v20, 5  ;;  %v369_v22 = vand.u32 31, %v367_v20  ;;  %v264_v23 = vsel %vm263_vm2, %v262_v19, 0  ;;  %v300_v19 = vshll.u32 %v260_v25, 8 }
  0xf7   : > { %v1177_v29 = vshrl.u32 %v264_v23, 5  ;;  %v266_v30 = vand.u32 31, %v264_v23  ;;  %vm253_vm2 = vcmp.le.f32.partialorder %v252_v12, 0.7853982 }
  0xf8   : > { %v370_v26 = vsub.s32 32, %v369_v22  ;;  %v372_v28 = vshll.u32 %v1096_v27, %v369_v22  ;;  %v375_v32 = vshll.u32 %v1097_v31, %v369_v22  ;;  %v378_v34 = vshll.u32 %v1098_v33, %v369_v22 }
  0xf9   : > { %v381_v36 = vshll.u32 %v1099_v35, %v369_v22  ;;  %v384_v38 = vshll.u32 %v1100_v37, %v369_v22  ;;  %vm387_vm3 = vcmp.lt.s32.totalorder %v368_v21, 1  ;;  %vm388_vm4 = vcmp.lt.s32.totalorder %v368_v21, 2 }
  0xfa   : > { %v373_v39 = vshrl.u32 %v1097_v31, %v370_v26  ;;  %v376_v40 = vshrl.u32 %v1098_v33, %v370_v26  ;;  %v379_v41 = vshrl.u32 %v1099_v35, %v370_v26  ;;  %v371_v42 = vshrl.u32 %v1096_v27, %v370_v26 }
  0xfb   : > { %v382_v43 = vshrl.u32 %v1100_v37, %v370_v26  ;;  %v385_v45 = vshrl.u32 %v1101_v44, %v370_v26  ;;  %v267_v49 = vsub.s32 32, %v266_v30  ;;  %vm389_vm5 = vcmp.lt.s32.totalorder %v368_v21, 3 }
  0xfc   : > { %v374_v46 = vor.u32 %v373_v39, %v372_v28  ;;  %v377_v47 = vor.u32 %v376_v40, %v375_v32  ;;  %v380_v48 = vor.u32 %v379_v41, %v378_v34  ;;  %vm390_vm6 = vcmp.lt.s32.totalorder %v368_v21, 4 }
  0xfd   : > { %v383_v50 = vor.u32 %v382_v43, %v381_v36  ;;  %v386_v51 = vor.u32 %v385_v45, %v384_v38  ;;  %v269_v59 = vshll.u32 %v1096_v27, %v266_v30  ;;  %v270_v62 = vshrl.u32 %v1097_v31, %v267_v49 }
  0xfe   : > { %v391_v52 = vsel %vm387_vm3, %v371_v42, %v374_v46  ;;  %v392_v53 = vsel %vm390_vm6, %v380_v48, 2102212464  ;;  %v395_v54 = vsel %vm387_vm3, %v374_v46, %v377_v47  ;;  %v399_v55 = vsel %vm387_vm3, %v377_v47, %v380_v48 }
  0xff   : > { %v393_v56 = vsel %vm389_vm5, %v377_v47, %v392_v53  ;;  %v396_v57 = vsel %vm390_vm6, %v383_v50, 920167782  ;;  %v400_v58 = vsel %vm390_vm6, %v386_v51, 1326507024  ;;  %v272_v63 = vshll.u32 %v1097_v31, %v266_v30 }
 0x100   : > { %v397_v60 = vsel %vm389_vm5, %v380_v48, %v396_v57  ;;  %v401_v61 = vsel %vm389_vm5, %v383_v50, %v400_v58  ;;  %v394_v0 = vsel %vm388_vm4, %v391_v52, %v393_v56  ;;  %v273_v3 = vshrl.u32 %v1098_v33, %v267_v49 }
 0x101   : > { %v398_v1 = vsel %vm388_vm4, %v395_v54, %v397_v60  ;;  %v402_v2 = vsel %vm388_vm4, %v399_v55, %v401_v61  ;;  %v271_v11 = vor.u32 %v270_v62, %v269_v59  ;;  %v275_v14 = vshll.u32 %v1098_v33, %v266_v30 }
 0x102   : > { %v1186_v4 = vmul.u32.u64.low %v1174_v24, %v402_v2  ;;  %v1187_v7 = vmul.u32.u64.high %v1174_v24, %v402_v2, %v1186_v4  ;;  %v1190_v9 = vmul.u32.u64.low %v1174_v24, %v398_v1  ;;  %v1191_v10 = vmul.u32.u64.high %v1174_v24, %v398_v1, %v1190_v9 }
 0x103   : > { %v274_v13 = vor.u32 %v273_v3, %v272_v63  ;;  %v276_v15 = vshrl.u32 %v1099_v35, %v267_v49  ;;  %v278_v16 = vshll.u32 %v1099_v35, %v266_v30  ;;  %v279_v17 = vshrl.u32 %v1100_v37, %v267_v49 }
 0x104   : > { %v282_v18 = vshrl.u32 %v1101_v44, %v267_v49  ;;  %v410_v20 = vmul.u32 %v1174_v24, %v394_v0  ;;  %v268_v21 = vshrl.u32 %v1096_v27, %v267_v49  ;;  %v281_v23 = vshll.u32 %v1100_v37, %v266_v30 }
 0x105   : > { %v277_v22 = vor.u32 %v276_v15, %v275_v14  ;;  %vm412_vm7 = vc.u32 %v1187_v7, %v1190_v9  ;;  %v413_v26 = vadd.s32 1, %v1191_v10  ;;  %v280_v28 = vor.u32 %v279_v17, %v278_v16 }
 0x106   : > { %vm284_vm8 = vcmp.lt.s32.totalorder %v1177_v29, 1  ;;  %v283_v31 = vor.u32 %v282_v18, %v281_v23  ;;  %vm286_vm9 = vcmp.lt.s32.totalorder %v1177_v29, 3  ;;  %vm287_vm10 = vcmp.lt.s32.totalorder %v1177_v29, 4 }
 0x107   : > { %v292_v32 = vsel %vm284_vm8, %v271_v11, %v274_v13  ;;  %v414_v25 = vsel %vm412_vm7, %v413_v26, %v1191_v10  ;;  %v289_v33 = vsel %vm287_vm10, %v277_v22, 2102212464  ;;  %v293_v24 = vsel %vm287_vm10, %v280_v28, 920167782 }
 0x108   : > { %v296_v27 = vsel %vm284_vm8, %v274_v13, %v277_v22  ;;  %v415_v34 = vadd.s32 %v414_v25, %v410_v20  ;;  %vm285_vm11 = vcmp.lt.s32.totalorder %v1177_v29, 2  ;;  %v294_v30 = vsel %vm286_vm9, %v277_v22, %v293_v24 }
 0x109   : > { %v297_v35 = vsel %vm287_vm10, %v283_v31, 1326507024  ;;  %v288_v36 = vsel %vm284_vm8, %v268_v21, %v271_v11  ;;  %v290_v37 = vsel %vm286_vm9, %v274_v13, %v289_v33  ;;  %v295_v38 = vsel %vm285_vm11, %v292_v32, %v294_v30 }
 0x10a   : > { %v298_v39 = vsel %vm286_vm9, %v280_v28, %v297_v35  ;;  %v416_v40 = vadd.s32 536870912, %v415_v34  ;;  %v1201_v42 = vmul.u32.u64.low %v300_v19, %v295_v38  ;;  %v1202_v43 = vmul.u32.u64.high %v300_v19, %v295_v38, %v1201_v42 }
 0x10b   : > { %v299_v41 = vsel %vm285_vm11, %v296_v27, %v298_v39  ;;  %v291_v47 = vsel %vm285_vm11, %v288_v36, %v290_v37  ;;  %v411_v63 = vadd.s32 %v1190_v9, %v1187_v7  ;;  %vm447_vm9 = vweird.f32 %v1160_v5 }
 0x10c   : > { %v1204_v44 = vmul.u32.u64.low %v300_v19, %v299_v41  ;;  %v1205_v45 = vmul.u32.u64.high %v300_v19, %v299_v41, %v1204_v44  ;;  %v417_v46 = vshrl.u32 %v416_v40, 30  ;;  %v310_v49 = vadd.s32 1, %v1202_v43 }
 0x10d   : > { %v307_v29 = vmul.u32 %v300_v19, %v291_v47 }
 0x10e   : > { %v418_v48 = vshll.u32 %v417_v46, 30  ;;  %vm309_vm12 = vc.u32 %v1205_v45, %v1201_v42  ;;  %v308_v20 = vadd.s32 %v1201_v42, %v1205_v45  ;;  %v441_v9 = vsub.s32 4, %v417_v46 }
 0x10f   : > { %v311_v51 = vsel %vm309_vm12, %v310_v49, %v1202_v43 }
 0x110   : > { %v419_v50 = vsub.s32 %v415_v34, %v418_v48  ;;  %v312_v52 = vadd.s32 %v311_v51, %v307_v29  ;;  %v442_v24 = vsel %vm357_vm15, %v441_v9, %v417_v46 }
 0x111   : > { %v444_v30 = vsel %vm356_vm0, 0, %v442_v24 }
 0x112   : > { %v421_v53 = vsub.s32 0, %v419_v50  ;;  %v313_v54 = vadd.s32 536870912, %v312_v52  ;;  %v657_v39 = vadd.s32 3, %v444_v30  ;;  %v448_v42 = vand.u32 3, %v444_v30 }
 0x114   : > { %v848_v55 = vmin.u32 %v421_v53, %v419_v50  ;;  %v314_v56 = vshrl.u32 %v313_v54, 30  ;;  %v658_v43 = vand.u32 3, %v657_v39  ;;  %vm450_vm3 = vcmp.eq.s32.totalorder %v448_v42, 0 }
 0x115   : > { %vm453_vm4 = vcmp.eq.s32.totalorder %v448_v42, 2  ;;  %vm449_vm7 = vcmp.lt.s32.totalorder %v448_v42, 2 }
 0x116   : > { %v423_v57 = vclz %v848_v55  ;;  %v315_v58 = vshll.u32 %v314_v56, 30  ;;  %v338_v38 = vsub.s32 4, %v314_v56  ;;  %vm663_vm5 = vcmp.eq.s32.totalorder %v658_v43, 2 }
 0x117   : > { %vm660_vm6 = vcmp.eq.s32.totalorder %v658_v43, 0  ;;  %vm659_vm8 = vcmp.lt.s32.totalorder %v658_v43, 2 }
 0x118   : > { %v849_v59 = vadd.s32 4294967294, %v423_v57  ;;  %v316_v60 = vsub.s32 %v312_v52, %v315_v58  ;;  %v339_v41 = vsel %vm254_vm1, %v338_v38, %v314_v56 }
 0x119   : > { %v341_v46 = vsel %vm253_vm2, 0, %v339_v41 }
 0x11a   : > { %vm850_vm13 = vcmp.lt.s32.totalorder %v849_v59, 0  ;;  %v318_v62 = vsub.s32 0, %v316_v60  ;;  %v345_v57 = vand.u32 3, %v341_v46 }
 0x11b   : > { %v426_v61 = vsel %vm850_vm13, 0, %v849_v59 }
 0x11c   : > { %v427_v0 = vsub.s32 32, %v426_v61  ;;  %v431_v1 = vsub.s32 4294967266, %v426_v61  ;;  %v844_v2 = vmin.u32 %v318_v62, %v316_v60  ;;  %v428_v3 = vshll.u32 %v419_v50, %v426_v61 }
 0x11d   : > { %v553_v50 = vadd.s32 3, %v341_v46  ;;  %vm350_vm10 = vcmp.eq.s32.totalorder %v345_v57, 2  ;;  %vm347_vm12 = vcmp.eq.s32.totalorder %v345_v57, 0 }
 0x11e   : > { %v429_v4 = vshrl.u32 %v411_v63, %v427_v0  ;;  %v432_v10 = vadd.s32 127, %v431_v1  ;;  %v320_v11 = vclz %v844_v2 }
 0x11f   : > { %v554_v58 = vand.u32 3, %v553_v50 }
 0x120   : > { %v430_v13 = vor.u32 %v429_v4, %v428_v3  ;;  %v433_v14 = vshll.u32 %v432_v10, 23  ;;  %v845_v15 = vadd.s32 4294967294, %v320_v11 }
 0x121   : > { %vm559_vm11 = vcmp.eq.s32.totalorder %v554_v58, 2  ;;  %vm556_vm13 = vcmp.eq.s32.totalorder %v554_v58, 0 }
 0x122   : > { %v434_v16 = vor.u32 4788187, %v433_v14  ;;  %vm846_vm14 = vcmp.lt.s32.totalorder %v845_v15, 0  ;;  %v437_v18 = vcvt.s32.f32 %v430_v13 }
 0x123   : > { %v323_v19 = vsel %vm846_vm14, 0, %v845_v15  ;;  %vm346_vm14 = vcmp.lt.s32.totalorder %v345_v57, 2 }
 0x124   : > { %v435_v17 = vand.u32 2147483647, %v434_v16  ;;  %v324_v21 = vsub.s32 32, %v323_v19  ;;  %v328_v22 = vsub.s32 4294967266, %v323_v19  ;;  %v325_v23 = vshll.u32 %v316_v60, %v323_v19 }
 0x126   : > { %v438_v7 = vmul.f32 %v437_v18, %v435_v17  ;;  %v326_v26 = vshrl.u32 %v308_v20, %v324_v21  ;;  %v329_v28 = vadd.s32 127, %v328_v22 }
 0x128   : > { %v439_v31 = vxor.u32 2147483648, %v438_v7  ;;  %v327_v32 = vor.u32 %v326_v26, %v325_v23  ;;  %v330_v25 = vshll.u32 %v329_v28, 23 }
 0x12a   : > { %v440_v33 = vsel %vm357_vm15, %v439_v31, %v438_v7  ;;  %v331_v34 = vor.u32 4788187, %v330_v25  ;;  %v334_v36 = vcvt.s32.f32 %v327_v32  ;;  %vm555_vm15 = vcmp.lt.s32.totalorder %v554_v58, 2 }
 0x12b   : > { %v443_v27 = vsel %vm356_vm0, %v1160_v5, %v440_v33  ;;  %vm344_vm0 = vweird.f32 %v1164_v8 }
 0x12c   : > { %1000 = vcosq.f32 %v443_v27  ;;  %v332_v35 = vand.u32 2147483647, %v331_v34 }
 0x12d   : > { %1002 = vsinq.f32 %v443_v27 }
 0x12e   : > { %v335_v37 = vmul.f32 %v334_v36, %v332_v35 }
 0x130   : > { %v336_v40 = vxor.u32 2147483648, %v335_v37 }
 0x132   : > { %v337_v6 = vsel %vm254_vm1, %v336_v40, %v335_v37 }
 0x133   : > { %v340_v44 = vsel %vm253_vm2, %v1164_v8, %v337_v6 }
 0x134   : > { %1004 = vcosq.f32 %v340_v44 }
 0x135   : > { %1006 = vsinq.f32 %v340_v44 }
 0x136   : > { %v1001_v45 = vpop.eup %1000 }
 0x137   : > { %v1003_v47 = vpop.eup %1002  ;;  %v454_v48 = vxor.u32 2147483648, %v1001_v45 }
 0x138   : > { %v451_v49 = vxor.u32 2147483648, %v1003_v47 }
 0x139   : > { %v455_v29 = vsel %vm453_vm4, %v454_v48, %v1003_v47  ;;  %v665_v12 = vsel %vm663_vm5, %v454_v48, %v1003_v47 }
 0x13a   : > { %v452_v51 = vsel %vm450_vm3, %v1001_v45, %v451_v49  ;;  %v662_v52 = vsel %vm660_vm6, %v1001_v45, %v451_v49 }
 0x13b   : > { %v456_v53 = vsel %vm449_vm7, %v452_v51, %v455_v29  ;;  %v666_v54 = vsel %vm659_vm8, %v662_v52, %v665_v12 }
 0x13c   : > { %v457_v55 = vsel %vm447_vm9, nan, %v456_v53  ;;  %v667_v56 = vsel %vm447_vm9, nan, %v666_v54 }
 0x13d   : > { %459 = vst [vmem:[%s1222_s30 + $0x10] sm:$0xff] %v457_v55  ;;  %669 = vst [vmem:[%s1222_s30 + $0x18] sm:$0xff] %v667_v56 }
 0x13e   : > { %v1005_v59 = vpop.eup %1004 }
 0x13f   : > { %v1007_v60 = vpop.eup %1006  ;;  %v351_v61 = vxor.u32 2147483648, %v1005_v59  ;;  %676 = sbr.rel (!%p1142_p4) target bundleno = 375 (0x177), region = 32 }
 0x140   : > { %v348_v62 = vxor.u32 2147483648, %v1007_v60 }
 0x141   : > { %v352_v5 = vsel %vm350_vm10, %v351_v61, %v1007_v60  ;;  %v561_v63 = vsel %vm559_vm11, %v351_v61, %v1007_v60 }
 0x142   : > { %v349_v0 = vsel %vm347_vm12, %v1005_v59, %v348_v62  ;;  %v558_v1 = vsel %vm556_vm13, %v1005_v59, %v348_v62 }
 0x143   : > { %v353_v2 = vsel %vm346_vm14, %v349_v0, %v352_v5  ;;  %v562_v3 = vsel %vm555_vm15, %v558_v1, %v561_v63 }
 0x144   : > { %v354_v4 = vsel %vm344_vm0, nan, %v353_v2  ;;  %v563_v10 = vsel %vm344_vm0, nan, %v562_v3 }
 0x145   : > { %458 = vst [vmem:[%s1222_s30] sm:$0xff] %v354_v4  ;;  %668 = vst [vmem:[%s1222_s30 + $0x8] sm:$0xff] %v563_v10 }
 0x146   : > { %s1300_s3 = smov (!%p679_p8, %s678_s3), 2 }
 0x147   : > { %s878_s8 = sshll.u32 %s1300_s3, 8 }
 0x148   : > { %p866_p9 = scmp.eq.s32.totalorder %s878_s8, 0 }
 0x149   : > { %s1242_s9 = sshrl.u32 (!%p866_p9), %s1300_s3, 1 }
 0x14a   : > { %689 = sbr.rel (%p866_p9) target bundleno = 375 (0x177), region = 36  ;;  %p867_p10 = scmp.le.s32.totalorder (!%p866_p9), %s1242_s9, 0 }
 0x151   : > { %790 = sbr.rel (%p867_p10) target bundleno = 354 (0x162), region = 84  ;;  %s1293_s11 = smov (!%p867_p10), %s1236_s7 }
 0x152   : > { %s1294_s12 = smov (!%p867_p10), %s1222_s30  ;;  %s1251_s14 = smov (!%p867_p10), 0  }
 0x153   : > { %s1076_s15 = smov (!%p867_p10), 0  }
 0x158 LB: >> { %v702_v8 = vld [vmem:[%s1070_s12] sm:$0xff]  ;;  %v704_v11 = vld [vmem:[%s1070_s12 + $0x10] sm:$0xff]  ;;  %v706_v13 = vld [vmem:[%s1070_s12 + $0x8] sm:$0xff]  ;;  %s710_s17 = sadd.s32 1, %s1074_s14  ;;  %s696_s15 = sadd.s32 1, %s1078_s15   ;;  %s1078_s15 = sphi %s1076_s15, %s696_s15   ;;  %s1074_s14 = sphi %s1251_s14, %s1295_s14   ;;  %s1070_s12 = sphi %s1294_s12, %s715_s12   ;;  %s1066_s11 = sphi %s1293_s11, %s716_s11  }
 0x159   : >> { %703 = vst [vmem:[%s1066_s11] sm:$0xff] %v702_v8  ;;  %705 = vst [vmem:[%s1066_s11 + $0x10] sm:$0xff] %v704_v11  ;;  %v708_v14 = vld [vmem:[%s1070_s12 + $0x18] sm:$0xff]  ;;  %p711_p11 = scmp.ge.s32.totalorder %s710_s17, %s1242_s9  ;;  %p695_p12 = scmp.ge.s32.totalorder %s696_s15, %s1242_s9 }
 0x15a   : >> { %707 = vst [vmem:[%s1066_s11 + $0x8] sm:$0xff] %v706_v13  ;;  %709 = vst [vmem:[%s1066_s11 + $0x18] sm:$0xff] %v708_v14 }
 0x15b   : >> { %s1302_s17 = smov (%p711_p11, %s710_s17), 0  ;;  %698 = sbr.rel (!%p695_p12) target bundleno = 344 (0x158), region = 90 }
 0x15c   : >> { %s868_s18 = sshll.u32 %s1302_s17, 5  ;;  %s1295_s14 = smov %s1302_s17 }
 0x15d   : >> { %s715_s12 = scalar_lea.vmem %s1222_s30, %s868_s18 [#allocation2]   ;;  %s716_s11 = scalar_lea.vmem %s1236_s7, %s868_s18  }
 0x162 PF: > { %s1267_s19 = sand.u32 1, %s1300_s3   ;;  %s881_s20 = sshll.u32 %s1242_s9, 5 }
 0x163   : > { %s1271_s21 = scalar_lea.vmem %s1222_s30, %s881_s20 [#allocation2]   ;;  %s723_s22 = scalar_lea.vmem %s1236_s7, %s881_s20  }
 0x164   : > { %p873_p13 = scmp.le.s32.totalorder %s1267_s19, 0 }
 0x165   : > { %s1080_s23 = smov (!%p873_p13), %s723_s22   ;;  %s1084_s24 = smov (!%p873_p13), %s1271_s21  }
 0x166   : > { %804 = sbr.rel (%p873_p13) target bundleno = 375 (0x177), region = 95  ;;  %s1088_s25 = smov (!%p873_p13), 0  }
 0x167   : > { %s1092_s26 = smov (!%p873_p13), 0  }
 0x16d LB: >> { %v733_v15 = vld [vmem:[%s1086_s24] sm:$0xff]  ;;  %v735_v16 = vld [vmem:[%s1086_s24 + $0x8] sm:$0xff]  ;;  %s737_s27 = sadd.s32 1, %s1090_s25  ;;  %s727_s26 = sadd.s32 1, %s1094_s26   ;;  %s1094_s26 = sphi %s1092_s26, %s727_s26   ;;  %s1090_s25 = sphi %s1088_s25, %s1089_s25   ;;  %s1086_s24 = sphi %s1084_s24, %s742_s24   ;;  %s1082_s23 = sphi %s1080_s23, %s743_s23  }
 0x16e   : >> { %734 = vst [vmem:[%s1082_s23] sm:$0xff] %v733_v15  ;;  %736 = vst [vmem:[%s1082_s23 + $0x8] sm:$0xff] %v735_v16  ;;  %p738_p0 = scmp.ge.s32.totalorder %s737_s27, %s1267_s19  ;;  %p726_p1 = scmp.ge.s32.totalorder %s727_s26, %s1267_s19 }
 0x170   : >> { %s1304_s27 = smov (%p738_p0, %s737_s27), 0  ;;  %729 = sbr.rel (!%p726_p1) target bundleno = 365 (0x16d), region = 101 }
 0x171   : >> { %s874_s28 = sshll.u32 %s1304_s27, 4  ;;  %s1089_s25 = smov %s1304_s27  }
 0x172   : >> { %s742_s24 = scalar_lea.vmem %s1271_s21, %s874_s28 [#allocation2]   ;;  %s743_s23 = scalar_lea.vmem %s723_s22, %s874_s28  }
 0x177 PF: > { %p9_p2 = scmp.ge.s32.totalorder %s1132_s13, 4   ;;  %s1296_s9 = smov %s1058_s10 }
 0x178   : > { %s1297_s10 = smov %s1140_s16  ;;  %s1298_s11 = smov %s1132_s13 }
 0x179   :  { %11 = sbr.rel (!%p9_p2) target bundleno = 2 (0x2), region = 112 }

</bundles_post_ra>
